<compile_context>
chip_gen: v7x
topology: tpu7x:2x2x1
jax: 0.10.0
libtpu: 0.0.40
codegen_flags: <defaults>
</compile_context>

<pallas_src>
import math

import jax
import jax.numpy as jnp
from jax.experimental import pallas as pl
from jax.experimental.pallas import tpu as pltpu


# Conservative usable-VMEM budget for the pipelined working set.  Fits v7x
# (64 MiB/TC) with headroom and is well inside v5e/v6e physical VMEM.
_VMEM_SOFT_BUDGET = 48 << 20


def _round_up(v, m):
    return ((v + m - 1) // m) * m


# ---------------------------------------------------------------------------
# Kernel: one (row-tile, col-tile) block of the GLU.
#   x_ref  : (tm, x_dim)   input dtype (cast to bf16 for the MXU)
#   wg_ref : (x_dim, tn)   bf16   gate-weight column panel
#   bg_ref : (1, tn)       f32
#   wf_ref : (x_dim, tn)   bf16   forward-weight column panel
#   bf_ref : (1, tn)       f32
#   o_ref  : (tm, tn)      out dtype
# ---------------------------------------------------------------------------
def _glu_kernel(x_ref, wg_ref, bg_ref, wf_ref, bf_ref, o_ref):
    x = x_ref[...].astype(jnp.bfloat16)                 # bf16 MXU operand
    gate = jnp.dot(x, wg_ref[...], preferred_element_type=jnp.float32) + bg_ref[...]
    fwd = jnp.dot(x, wf_ref[...], preferred_element_type=jnp.float32) + bf_ref[...]
    o_ref[...] = (jax.nn.sigmoid(gate) * fwd).astype(o_ref.dtype)


# ---------------------------------------------------------------------------
# Wrapper.
#   x            : [batch, *, x_dim]   (any float dtype; bf16 input is fine)
#   w_gate/w_fwd : (x_dim, out_dim)    (input-major so forward is x @ W + b)
#   b_gate/b_fwd : (1, out_dim) or (out_dim,)
# returns        : [batch, *, out_dim]
# ---------------------------------------------------------------------------
def gating_layer(x, w_gate, b_gate, w_fwd, b_fwd, *, block_rows=256, out_dtype=None):
    x_dim = x.shape[-1]
    out_dim = w_gate.shape[1]
    lead = x.shape[:-1]
    M = int(math.prod(lead)) if lead else 1
    out_dtype = x.dtype if out_dtype is None else out_dtype

    xm = x.reshape(M, x_dim)                            # free reshape, no pad / copy

    # bf16 weight panels for the MXU; f32 biases added after f32 accumulation.
    wg = w_gate.astype(jnp.bfloat16)
    wf = w_fwd.astype(jnp.bfloat16)
    bg = b_gate.reshape(1, out_dim).astype(jnp.float32)
    bf = b_fwd.reshape(1, out_dim).astype(jnp.float32)

    # ---- tile selection ------------------------------------------------------
    # Rows: tall tile (amortizes per-step overhead, fills the MXU), multiple of 8.
    tm = _round_up(min(block_rows, _round_up(M, 8)), 8)
    # Columns: full extent for small out_dim (single lane-dense N tile), else a
    # 512-wide multiple-of-128 panel with a ragged last tile.
    tn = out_dim if out_dim <= 512 else 512

    def _vmem_bytes(tm_, tn_):
        # Pipeline double-buffers every operand (2x); weights are bf16 (2 B).
        xb = 2 * tm_ * x_dim * xm.dtype.itemsize
        wb = 2 * 2 * x_dim * tn_ * 2
        bb = 2 * 2 * tn_ * 4
        ob = 2 * tm_ * tn_ * jnp.dtype(out_dtype).itemsize
        return xb + wb + bb + ob

    # Shrink tiles (keeping lane/sublane alignment) until the working set fits.
    while _vmem_bytes(tm, tn) > _VMEM_SOFT_BUDGET and tn > 128 and tn % 256 == 0:
        tn //= 2
    while _vmem_bytes(tm, tn) > _VMEM_SOFT_BUDGET and tm > 8 and tm % 16 == 0:
        tm //= 2

    m_tiles = pl.cdiv(M, tm)
    n_tiles = pl.cdiv(out_dim, tn)

    vmem_limit = max(32 << 20,
                     min(int(1.5 * _vmem_bytes(tm, tn)) + (4 << 20), 64 << 20))

    cost = pl.CostEstimate(
        flops=4 * M * x_dim * out_dim + 3 * M * out_dim,
        transcendentals=M * out_dim,
        bytes_accessed=(xm.size * xm.dtype.itemsize
                        + wg.size * 2 + wf.size * 2
                        + bg.size * 4 + bf.size * 4
                        + M * out_dim * jnp.dtype(out_dtype).itemsize),
    )

    out = pl.pallas_call(
        _glu_kernel,
        out_shape=jax.ShapeDtypeStruct((M, out_dim), out_dtype),
        grid=(m_tiles, n_tiles),
        in_specs=[
            pl.BlockSpec((tm, x_dim), lambda i, j: (i, 0)),
            pl.BlockSpec((x_dim, tn), lambda i, j: (0, j)),
            pl.BlockSpec((1, tn), lambda i, j: (0, j)),
            pl.BlockSpec((x_dim, tn), lambda i, j: (0, j)),
            pl.BlockSpec((1, tn), lambda i, j: (0, j)),
        ],
        out_specs=pl.BlockSpec((tm, tn), lambda i, j: (i, j)),
        compiler_params=pltpu.CompilerParams(
            dimension_semantics=("parallel", "parallel"),
            vmem_limit_bytes=vmem_limit,
        ),
        cost_estimate=cost,
    )(xm, wg, bg, wf, bf)

    return out.reshape(lead + (out_dim,))


# ---------------------------------------------------------------------------
# Deterministic parameter init (matches torch.nn.Linear's U(-1/sqrt(fan_in), ..)).
# ---------------------------------------------------------------------------
def init_params(key, x_dim, out_dim):
    def linear(k):
        k1, k2 = jax.random.split(k)
        bound = 1.0 / math.sqrt(x_dim)
        w = jax.random.uniform(k1, (x_dim, out_dim), jnp.float32, -bound, bound)
        b = jax.random.uniform(k2, (1, out_dim), jnp.float32, -bound, bound)
        return w, b

    kg, kf = jax.random.split(key)
    w_gate, b_gate = linear(kg)
    w_fwd, b_fwd = linear(kf)
    return w_gate, b_gate, w_fwd, b_fwd


# ---------------------------------------------------------------------------
# Pure-JAX reference mirroring the PyTorch forward (f32 everywhere).
# ---------------------------------------------------------------------------
def reference(x, w_gate, b_gate, w_fwd, b_fwd):
    return jax.nn.sigmoid(x @ w_gate + b_gate) * (x @ w_fwd + b_fwd)


# ---------------------------------------------------------------------------
if __name__ == "__main__":
    B, S, X_DIM, OUT_DIM = 2, 8, 32, 32   # x = [batch, seq, x_dim]

    key = jax.random.PRNGKey(0)
    kx, kp = jax.random.split(key)
    x = jax.random.normal(kx, (B, S, X_DIM), jnp.float32)
    w_gate, b_gate, w_fwd, b_fwd = init_params(kp, X_DIM, OUT_DIM)

    out = gating_layer(x, w_gate, b_gate, w_fwd, b_fwd)
    out = jax.block_until_ready(out)

    ref = reference(x, w_gate, b_gate, w_fwd, b_fwd)
    assert out.shape == (B, S, OUT_DIM), out.shape
    # bf16 MXU operands -> loose-ish tolerance vs f32 reference.
    if not bool(jnp.allclose(out, ref, atol=3e-2, rtol=3e-2)):
        raise AssertionError(
            f"mismatch, max abs err = {float(jnp.max(jnp.abs(out - ref)))}")
    print("KERNEL_OK")
</pallas_src>

<mosaic_0001>
module attributes {stable_mosaic.version = 11 : i64} {
  func.func @_glu_kernel(%arg0: i32, %arg1: i32, %arg2: memref<16x32xf32, #tpu.memory_space<vmem>>, %arg3: memref<32x32xbf16, #tpu.memory_space<vmem>>, %arg4: memref<1x32xf32, #tpu.memory_space<vmem>>, %arg5: memref<32x32xbf16, #tpu.memory_space<vmem>>, %arg6: memref<1x32xf32, #tpu.memory_space<vmem>>, %arg7: memref<16x32xf32, #tpu.memory_space<vmem>>) attributes {dimension_semantics = [#tpu.dimension_semantics<parallel>, #tpu.dimension_semantics<parallel>], iteration_bounds = array<i64: 1, 1>, scalar_prefetch = 0 : i64, scratch_operands = 0 : i64, tpu.core_type = #tpu.core_type<tc>, window_params = [{transform_indices = @transform_0, window_bounds = array<i64: 16, 32>}, {transform_indices = @transform_1, window_bounds = array<i64: 32, 32>}, {transform_indices = @transform_2, window_bounds = array<i64: 1, 32>}, {transform_indices = @transform_3, window_bounds = array<i64: 32, 32>}, {transform_indices = @transform_4, window_bounds = array<i64: 1, 32>}, {transform_indices = @transform_5, window_bounds = array<i64: 16, 32>}]} {
    %c0 = arith.constant 0 : index
    %c0_0 = arith.constant 0 : index
    %0 = vector.load %arg2[%c0, %c0_0] : memref<16x32xf32, #tpu.memory_space<vmem>>, vector<16x32xf32>
    %1 = arith.truncf %0 : vector<16x32xf32> to vector<16x32xbf16>
    %c0_1 = arith.constant 0 : index
    %c0_2 = arith.constant 0 : index
    %2 = vector.load %arg3[%c0_1, %c0_2] : memref<32x32xbf16, #tpu.memory_space<vmem>>, vector<32x32xbf16>
    %cst = arith.constant dense<0.000000e+00> : vector<16x32xf32>
    %3 = tpu.matmul %1, %2, %cst {dimension_numbers = #tpu.dot_dimension_numbers<[1], [0], [0], [1], [0, 0, 1, 1], [], []>} : vector<16x32xbf16>, vector<32x32xbf16>, vector<16x32xf32> -> vector<16x32xf32>
    %c0_3 = arith.constant 0 : index
    %c0_4 = arith.constant 0 : index
    %4 = vector.load %arg4[%c0_3, %c0_4] : memref<1x32xf32, #tpu.memory_space<vmem>>, vector<1x32xf32>
    %5 = vector.broadcast %4 : vector<1x32xf32> to vector<16x32xf32>
    %6 = arith.addf %3, %5 : vector<16x32xf32>
    %c0_5 = arith.constant 0 : index
    %c0_6 = arith.constant 0 : index
    %7 = vector.load %arg5[%c0_5, %c0_6] : memref<32x32xbf16, #tpu.memory_space<vmem>>, vector<32x32xbf16>
    %cst_7 = arith.constant dense<0.000000e+00> : vector<16x32xf32>
    %8 = tpu.matmul %1, %7, %cst_7 {dimension_numbers = #tpu.dot_dimension_numbers<[1], [0], [0], [1], [0, 0, 1, 1], [], []>} : vector<16x32xbf16>, vector<32x32xbf16>, vector<16x32xf32> -> vector<16x32xf32>
    %c0_8 = arith.constant 0 : index
    %c0_9 = arith.constant 0 : index
    %9 = vector.load %arg6[%c0_8, %c0_9] : memref<1x32xf32, #tpu.memory_space<vmem>>, vector<1x32xf32>
    %10 = vector.broadcast %9 : vector<1x32xf32> to vector<16x32xf32>
    %11 = arith.addf %8, %10 : vector<16x32xf32>
    %12 = arith.negf %6 : vector<16x32xf32>
    %13 = math.exp %12 : vector<16x32xf32>
    %cst_10 = arith.constant 1.000000e+00 : f32
    %14 = vector.broadcast %cst_10 : f32 to vector<16x32xf32>
    %15 = arith.addf %14, %13 : vector<16x32xf32>
    %16 = arith.divf %14, %15 : vector<16x32xf32>
    %17 = arith.mulf %16, %11 : vector<16x32xf32>
    %c0_11 = arith.constant 0 : index
    %c0_12 = arith.constant 0 : index
    %18 = vector.load %arg7[%c0_11, %c0_12] : memref<16x32xf32, #tpu.memory_space<vmem>>, vector<16x32xf32>
    tpu.vector_store %arg7[%c0_11, %c0_12], %17 {strides = array<i32>} : memref<16x32xf32, #tpu.memory_space<vmem>>, vector<16x32xf32>,
    return
  }
  func.func @transform_0(%arg0: i32, %arg1: i32) -> (i32, i32) {
    %c0_i32 = arith.constant 0 : i32
    %c0_i32_0 = arith.constant 0 : i32
    return %arg0, %c0_i32 : i32, i32
  }
  func.func @transform_1(%arg0: i32, %arg1: i32) -> (i32, i32) {
    %c0_i32 = arith.constant 0 : i32
    %c0_i32_0 = arith.constant 0 : i32
    return %c0_i32, %arg1 : i32, i32
  }
  func.func @transform_2(%arg0: i32, %arg1: i32) -> (i32, i32) {
    %c0_i32 = arith.constant 0 : i32
    %c0_i32_0 = arith.constant 0 : i32
    return %c0_i32, %arg1 : i32, i32
  }
  func.func @transform_3(%arg0: i32, %arg1: i32) -> (i32, i32) {
    %c0_i32 = arith.constant 0 : i32
    %c0_i32_0 = arith.constant 0 : i32
    return %c0_i32, %arg1 : i32, i32
  }
  func.func @transform_4(%arg0: i32, %arg1: i32) -> (i32, i32) {
    %c0_i32 = arith.constant 0 : i32
    %c0_i32_0 = arith.constant 0 : i32
    return %c0_i32, %arg1 : i32, i32
  }
  func.func @transform_5(%arg0: i32, %arg1: i32) -> (i32, i32) {
    %c0_i32 = arith.constant 0 : i32
    return %arg0, %arg1 : i32, i32
  }
}

</mosaic_0001>

<bundles_post_ra>
// kernel: tpu_custom_call.1
= control target key start
LH: loop header
LB: loop body
LE: loop exit
PB: predicated region body
PF: predicated region fallthrough
CT: control target
= control target key end

     0   :  { %10 = vsyncpa [#allocation3], 0  ;;  %s490_s0 = inlined_call_operand.hbm [shape: f32[16,32], index: 0, kind: input, shape index: {}]   ;;  %s491_s1 = inlined_call_operand.hbm [shape: bf16[32,32], index: 1, kind: input, shape index: {}]   ;;  %s492_s2 = inlined_call_operand.vmem [shape: f32[1,32], index: 2, kind: input, shape index: {}]   ;;  %s493_s3 = inlined_call_operand.hbm [shape: bf16[32,32], index: 3, kind: input, shape index: {}]   ;;  %s494_s4 = inlined_call_operand.vmem [shape: f32[1,32], index: 4, kind: input, shape index: {}]   ;;  %s495_s5 = inlined_call_operand.hbm [shape: f32[16,32], index: 5, kind: output, shape index: {}]  }
   0x1   :  { %11 = vsyncpa [#allocation6], 0 }
   0x2   :  { %12 = vsyncpa [#allocation4], 0  ;;  %s380_s18 = smov [#allocation5]   ;;  %s286_s22 = scalar_lea.hbm %s491_s1, 256 }
   0x3   :  { %s30_s19 = sshll.u32 %s380_s18, 4  ;;  %p287_p0 = scmp.ne.s32.totalorder %s491_s1, %s286_s22  ;;  %s31_s19 = int_to_ptr.vmem [resolvable:$true] %s30_s19 }
   0x4   :  { %p290_p1 = scmp.lt.u32.totalorder %s286_s22, %s491_s1 }
   0x6   :  { %p292_p2 = pnand %p290_p1, %p287_p0 }
   0x8   :  { %295 = shalt.err (!%p292_p2)
}
   0x9   :  { %s296_s27 = scalar_lea.vmem %s31_s19, 256  ;;  %p301_p4 = scmp.lt.s32.totalorder %s31_s19, %s31_s19 }
   0xa   :  { %p297_p3 = scmp.ne.s32.totalorder %s31_s19, %s296_s27  ;;  %p302_p5 = scmp.lt.s32.totalorder %s296_s27, %s296_s27 }
   0xc   :  { %p303_p6 = por %p302_p5, %p301_p4 }
   0xe   :  { %p304_p7 = pnand %p303_p6, %p297_p3 }
  0x10   :  { %307 = shalt.err (!%p304_p7)
}
  0x11   :  { %s381_s28 = smov 64   ;;  %s382_s29 = smov 4  }
  0x12   :  { %36 = dma.hbm_to_vmem [thread:$0]  %s491_s1, 256, %s31_s19, [#allocation6], %s381_s28, %s381_s28, %s382_s29  }
  0x13   :  { %s383_s7 = smov [#allocation2]   ;;  %s308_s11 = scalar_lea.hbm %s490_s0, 256 }
  0x14   :  { %s18_s8 = sshll.u32 %s383_s7, 4  ;;  %p309_p8 = scmp.ne.s32.totalorder %s490_s0, %s308_s11  ;;  %s19_s8 = int_to_ptr.vmem [resolvable:$true] %s18_s8 }
  0x15   :  { %p312_p9 = scmp.lt.u32.totalorder %s308_s11, %s490_s0 }
  0x17   :  { %p314_p10 = pnand %p312_p9, %p309_p8 }
  0x19   :  { %317 = shalt.err (!%p314_p10)
}
  0x1a   :  { %s318_s16 = scalar_lea.vmem %s19_s8, 256  ;;  %p323_p12 = scmp.lt.s32.totalorder %s19_s8, %s19_s8 }
  0x1b   :  { %p319_p11 = scmp.ne.s32.totalorder %s19_s8, %s318_s16  ;;  %p324_p13 = scmp.lt.s32.totalorder %s318_s16, %s318_s16 }
  0x1d   :  { %p325_p0 = por %p324_p13, %p323_p12 }
  0x1f   :  { %p326_p1 = pnand %p325_p0, %p319_p11 }
  0x21   :  { %329 = shalt.err (!%p326_p1)
}
  0x22   :  { %s384_s1 = smov 128   ;;  %s385_s17 = smov 8  }
  0x23   :  { %24 = dma.hbm_to_vmem [thread:$0]  %s490_s0, 256, %s19_s8, [#allocation3], %s384_s1, %s384_s1, %s385_s17  }
  0x24   :  { %s386_s20 = smov [#allocation7]   ;;  %s330_s24 = scalar_lea.hbm %s493_s3, 256 }
  0x25   :  { %s44_s21 = sshll.u32 %s386_s20, 4  ;;  %p331_p2 = scmp.ne.s32.totalorder %s493_s3, %s330_s24  ;;  %s45_s21 = int_to_ptr.vmem [resolvable:$true] %s44_s21 }
  0x26   :  { %p334_p3 = scmp.lt.u32.totalorder %s330_s24, %s493_s3 }
  0x28   :  { %p336_p4 = pnand %p334_p3, %p331_p2 }
  0x2a   :  { %339 = shalt.err (!%p336_p4)
}
  0x2b   :  { %s340_s6 = scalar_lea.vmem %s45_s21, 256  ;;  %p345_p6 = scmp.lt.s32.totalorder %s45_s21, %s45_s21 }
  0x2c   :  { %p341_p5 = scmp.ne.s32.totalorder %s45_s21, %s340_s6  ;;  %p346_p7 = scmp.lt.s32.totalorder %s340_s6, %s340_s6 }
  0x2e   :  { %p347_p8 = por %p346_p7, %p345_p6 }
  0x30   :  { %p348_p9 = pnand %p347_p8, %p341_p5 }
  0x32   :  { %351 = shalt.err (!%p348_p9)
}
  0x33   :  { %50 = dma.hbm_to_vmem [thread:$0]  %s493_s3, 256, %s45_s21, [#allocation6], %s381_s28, %s381_s28, %s382_s29  }
  0x34   :  { %374 = dma.done.wait [#allocation3], 256  }
  0x35   :  { %375 = vsyncadd [#allocation3], 4294967040 }
  0x36   :  { %376 = dma.done.wait [#allocation6], 512  }
  0x37   :  { %377 = vsyncadd [#allocation6], 4294966784  ;;  %v387_v0 = vmov 0.0   ;;  %vm388_vm0 = vmmov 0   ;;  %v274_v1 = vld [vmem:[#allocation5] sm:$0xff]   ;;  %v275_v2 = vld [vmem:[#allocation5 + $0x8] sm:$0xff]  }
  0x38   :  { %248 = vmatprep.subr.bf16.mxu0 %v387_v0  ;;  %252 = vmatprep.mubr.msk.bf16.mxu0 %vm388_vm0, %v387_v0  ;;  %v63_v3 = vld [vmem:[#allocation2] sm:$0xff]  ;;  %v64_v4 = vld [vmem:[#allocation2 + $0x8] sm:$0xff]  ;;  %vm89_vm1 = vcmask 261120   ;;  %s389_s8 = smov [#allocation8]  }
  0x39   :  { %256 = vmatprep.subr.bf16.mxu1 %v387_v0  ;;  %260 = vmatprep.mubr.msk.bf16.mxu1 %vm388_vm0, %v387_v0  ;;  %v276_v5 = vld [vmem:[#allocation7] sm:$0xff]   ;;  %v65_v6 = vpack.c.bf16 %v64_v4, %v63_v3  ;;  %v277_v7 = vld [vmem:[#allocation7 + $0x8] sm:$0xff]   ;;  %s219_s9 = sshll.u32 %s389_s8, 4  ;;  %s220_s9 = int_to_ptr.vmem [resolvable:$true] %s219_s9 }
  0x3a   :  { %249 = vmatpush3.bf16.msra.mxu0 %v274_v1  ;;  %257 = vmatpush3.bf16.msra.mxu1 %v276_v5  ;;  %v232_v8 = vld [vmem:[%s492_s2] ss:$0 sm:$0xff]  ;;  %s352_s10 = scalar_lea.vmem %s220_s9, 256  ;;  %p357_p11 = scmp.lt.s32.totalorder %s220_s9, %s220_s9 }
  0x3b   :  { %250 = vmatprep.subr.bf16.mxu0 %v387_v0  ;;  %258 = vmatprep.subr.bf16.mxu1 %v387_v0  ;;  %v236_v25 = vld [vmem:[%s494_s4] ss:$0 sm:$0xff]  ;;  %p353_p10 = scmp.ne.s32.totalorder %s220_s9, %s352_s10  ;;  %p358_p12 = scmp.lt.s32.totalorder %s352_s10, %s352_s10 }
  0x3d   :  { %p359_p13 = por %p358_p12, %p357_p11 }
  0x3e   :  { %251 = vmatpush3.bf16.msra.mxu0 %v275_v2  ;;  %259 = vmatpush3.bf16.msra.mxu1 %v277_v7 }
  0x3f   :  { %p360_p0 = pnand %p359_p13, %p353_p10 }
  0x41   :  { %253 = vmatmul.mubr.msk.bf16.vlgmr.msra.gmra.mrb[0].mxu0 %vm89_vm1, %v65_v6  ;;  %261 = vmatmul.mubr.msk.bf16.vlgmr.msra.gmra.mrb[0].mxu1 %vm89_vm1, %v65_v6 }
 0x114   :  { %v127_v9 = vpop.f32.mrb[0].mxu0  ;;  %v191_v16 = vpop.f32.mrb[0].mxu1 }
 0x115   :  { %v128_v10 = vadd.f32 %v232_v8, %v127_v9  ;;  %v254_v11 = vpop.f32.mrb[1].mxu0  ;;  %v262_v17 = vpop.f32.mrb[1].mxu1  ;;  %v192_v26 = vadd.f32 %v236_v25, %v191_v16 }
 0x116   :  { %v130_v12 = vpop.f32.mrb[2].mxu0  ;;  %v194_v19 = vpop.f32.mrb[2].mxu1 }
 0x117   :  { %v240_v13 = vmul.f32 -1.442695, %v128_v10  ;;  %v131_v14 = vadd.f32 %v232_v8, %v130_v12  ;;  %v255_v15 = vpop.f32.mrb[3].mxu0  ;;  %v263_v20 = vpop.f32.mrb[3].mxu1  ;;  %v195_v29 = vadd.f32 %v236_v25, %v194_v19 }
 0x119   :  { %278 = vpow2.f32 %v240_v13  ;;  %v241_v18 = vmul.f32 -1.442695, %v131_v14 }
 0x11b   :  { %280 = vpow2.f32 %v241_v18 }
 0x123   :  { %v279_v21 = vpop.eup %278 }
 0x124   :  { %v204_v22 = vadd.f32 1.0, %v279_v21 }
 0x125   :  { %v281_v23 = vpop.eup %280 }
 0x126   :  { %282 = vrcp.f32 %v204_v22  ;;  %v205_v24 = vadd.f32 1.0, %v281_v23 }
 0x128   :  { %284 = vrcp.f32 %v205_v24 }
 0x130   :  { %v283_v27 = vpop.eup %282 }
 0x131   :  { %v210_v28 = vmul.f32 %v283_v27, %v192_v26 }
 0x132   :  { %v285_v30 = vpop.eup %284 }
 0x133   :  { %212 = vst.msk [vmem:[#allocation8] sm:$0xff] %vm89_vm1, %v210_v28  ;;  %v211_v31 = vmul.f32 %v285_v30, %v195_v29 }
 0x135   :  { %213 = vst.msk [vmem:[#allocation8 + $0x8] sm:$0xff] %vm89_vm1, %v211_v31 }
 0x136   :  { %363 = shalt.err (!%p360_p0)
}
 0x137   :  { %s364_s12 = scalar_lea.hbm %s495_s5, 256 }
 0x138   :  { %p365_p1 = scmp.ne.s32.totalorder %s495_s5, %s364_s12  ;;  %p368_p2 = scmp.lt.u32.totalorder %s364_s12, %s495_s5 }
 0x13a   :  { %p370_p3 = pnand %p368_p2, %p365_p1 }
 0x13c   :  { %373 = shalt.err (!%p370_p3)
}
 0x13d   :  { %225 = dma.vmem_to_hbm [thread:$0]  %s220_s9, 256, %s495_s5, [#allocation4], %s384_s1, %s384_s1, %s385_s17  }
 0x13e   :  { %378 = dma.done.wait [#allocation4], 256  }
 0x13f   :  { %379 = vsyncadd [#allocation4], 4294967040 }
 0x140   :  { %229 = vsyncpa [#allocation3], 1 }
 0x141   :  { %230 = vsyncpa [#allocation6], 1 }
 0x142   :  { %231 = vsyncpa [#allocation4], 1 }

</bundles_post_ra>
